<compile_context>
chip_gen: v5e
topology: v5e:2x2
jax: 0.10.0
libtpu: 0.0.40
codegen_flags: <defaults>
</compile_context>

<pallas_src>
import functools

import numpy as np
import jax
import jax.numpy as jnp
from jax.experimental import pallas as pl
from jax.experimental.pallas import tpu as pltpu


def make_pos_encoding(seq_len: int, d_in: int) -> jnp.ndarray:
    """Deterministic buffer setup (matches the PyTorch __init__; assumes even
    d_in, same as the original module). Kept in float32, like the torch buffer."""
    pos = np.arange(0, seq_len, dtype=np.float32)[:, None].repeat(d_in, axis=1)
    denominator = 1.0 / 10000.0 ** (np.arange(0, d_in, 2, dtype=np.float32) / d_in)
    pe = pos.copy()
    pe[:, 0::2] = np.sin(pos[:, 0::2] * denominator)
    pe[:, 1::2] = np.cos(pos[:, 1::2] * denominator)
    return jnp.asarray(pe, dtype=jnp.float32)


def _pe_kernel(x_ref, pe_ref, o_ref, *, scale):
    # x_ref / pe_ref / o_ref are all 2-D (row_tile, lane). Compute in f32
    # (pe stays an fp32 buffer, like the torch module), cast once on the store.
    x = x_ref[...].astype(jnp.float32)
    o_ref[...] = (x * scale + pe_ref[...].astype(jnp.float32)).astype(o_ref.dtype)


def _choose_row_tile(rows: int, lane: int, itemsize: int, batch: int,
                     target_bytes: int = 4 << 20) -> int:
    """Row-tile chooser.

    * granularity matches packed-sublane rows for the dtype (8 f32, 16 bf16,
      32 int8/fp8) so packed rows are never partially masked.
    * ~4 MiB blocks: big enough to amortize the ~0.35 us/step overhead, small
      enough that 3 operands x 2 buffers (plus an f32 pe tile) stay well under
      v7x's 64 MiB physical VMEM.
    * cap so the (row_tiles x batch) parallel grid has >= 2 steps (keeps both
      v7x TensorCores busy even for B == 1).
    * snap to a divisor of `rows` when possible so there is no ragged tail
      block (all stores stay unmasked)."""
    gran = 8 * max(1, 4 // itemsize)
    if rows <= gran:
        return rows  # full row extent (full-array exception to (8,128))
    max_tr = (target_bytes // max(1, lane * itemsize)) // gran * gran
    max_tr = max(gran, min(max_tr, (rows // gran) * gran))
    # Guarantee >= 2 parallel grid steps for v7x megacore when rows allow it.
    if batch * ((rows + max_tr - 1) // max_tr) < 2 and rows >= 2 * gran:
        max_tr = max(gran, ((rows // 2) // gran) * gran)
    for tr in range(max_tr, gran - 1, -gran):
        if rows % tr == 0:
            return tr
    return max_tr  # ragged tail fallback; blocks still sublane-aligned


def sinusoidal_positional_encoding(embeddings: jnp.ndarray,
                                   pos_encoding: jnp.ndarray) -> jnp.ndarray:
    B, S, D = embeddings.shape
    assert pos_encoding.shape == (S, D)
    scale = float(np.sqrt(D))  # true d_in, computed before any padding/tiling

    x = embeddings
    pe = pos_encoding
    pad = 0
    # Present a lane-dense view (last dim a multiple of 128) to the kernel.
    if D % 128 == 0:
        lane = D
    elif (S * D) % 128 == 0:
        lane = 128
    else:
        # Awkward D: pad the feature dim to the next multiple of 128 (unmasked
        # vst beats masked partial stores by ~4.5x on the store path).
        pad = (-D) % 128
        x = jnp.pad(x, ((0, 0), (0, 0), (0, pad)))
        pe = jnp.pad(pe, ((0, 0), (0, pad)))
        lane = D + pad
    Dp = D + pad
    rows = (S * Dp) // lane

    x2 = x.reshape(B, rows, lane)
    pe2 = pe.reshape(rows, lane)  # stays f32; add is done in f32 in-kernel

    itemsize = jnp.dtype(embeddings.dtype).itemsize
    tr = _choose_row_tile(rows, lane, itemsize, B)
    n_row_tiles = pl.cdiv(rows, tr)

    out2 = pl.pallas_call(
        functools.partial(_pe_kernel, scale=scale),
        out_shape=jax.ShapeDtypeStruct((B, rows, lane), embeddings.dtype),
        grid_spec=pltpu.PrefetchScalarGridSpec(
            num_scalar_prefetch=0,
            # Row-tile axis outer so the pe block index is constant across the
            # inner batch loop -> pe DMA'd once per row tile, not per step.
            grid=(n_row_tiles, B),
            in_specs=[
                pl.BlockSpec((pl.Squeezed(), tr, lane), lambda r, b: (b, r, 0)),
                pl.BlockSpec((tr, lane), lambda r, b: (r, 0)),
            ],
            out_specs=pl.BlockSpec((pl.Squeezed(), tr, lane),
                                   lambda r, b: (b, r, 0)),
        ),
        compiler_params=pltpu.CompilerParams(
            # No cross-iteration carry: both axes are genuinely parallel so
            # v7x can shard the full (row_tiles x batch) grid across its 2 TCs.
            dimension_semantics=("parallel", "parallel"),
            # 4 MiB x/out tiles double-buffered + f32 pe tiles: <= ~32 MiB;
            # 48 MiB leaves headroom on every generation (incl. v7x's 64 MiB).
            vmem_limit_bytes=48 << 20,
        ),
    )(x2, pe2)

    out = out2.reshape(B, S, Dp)
    if pad:
        out = out[:, :, :D]
    return out


if __name__ == "__main__":
    key = jax.random.PRNGKey(0)

    # Main shape consistent with the module: batch=2, seq=8, hidden=32.
    B, S, D = 2, 8, 32
    x = jax.random.normal(key, (B, S, D), dtype=jnp.float32)
    pe = make_pos_encoding(S, D)
    out = jax.block_until_ready(sinusoidal_positional_encoding(x, pe))
    ref = x * float(np.sqrt(D)) + pe[None, :, :]
    np.testing.assert_allclose(np.asarray(out), np.asarray(ref),
                               rtol=1e-6, atol=1e-6)

    # Exercise the padded (non-128-aligned) path as well.
    B2, S2, D2 = 2, 5, 20
    x2 = jax.random.normal(jax.random.PRNGKey(1), (B2, S2, D2), dtype=jnp.float32)
    pe2 = make_pos_encoding(S2, D2)
    out2 = jax.block_until_ready(sinusoidal_positional_encoding(x2, pe2))
    ref2 = x2 * float(np.sqrt(D2)) + pe2[None, :, :]
    np.testing.assert_allclose(np.asarray(out2), np.asarray(ref2),
                               rtol=1e-6, atol=1e-6)

    print("KERNEL_OK")
</pallas_src>

<mosaic_0001>
module attributes {stable_mosaic.version = 11 : i64} {
  func.func @_pe_kernel(%arg0: i32, %arg1: i32, %arg2: memref<1x2x128xf32, #tpu.memory_space<vmem>>, %arg3: memref<2x128xf32, #tpu.memory_space<vmem>>, %arg4: memref<1x2x128xf32, #tpu.memory_space<vmem>>) attributes {dimension_semantics = [#tpu.dimension_semantics<parallel>, #tpu.dimension_semantics<parallel>], iteration_bounds = array<i64: 1, 2>, scalar_prefetch = 0 : i64, scratch_operands = 0 : i64, tpu.core_type = #tpu.core_type<tc>, window_params = [{transform_indices = @transform_0, window_bounds = array<i64: 1, 2, 128>}, {transform_indices = @transform_1, window_bounds = array<i64: 2, 128>}, {transform_indices = @transform_2, window_bounds = array<i64: 1, 2, 128>}]} {
    %c0 = arith.constant 0 : index
    %c0_0 = arith.constant 0 : index
    %c0_1 = arith.constant 0 : index
    %0 = vector.load %arg2[%c0, %c0_0, %c0_1] : memref<1x2x128xf32, #tpu.memory_space<vmem>>, vector<1x2x128xf32>
    %1 = vector.shape_cast %0 : vector<1x2x128xf32> to vector<2x128xf32>
    %cst = arith.constant 5.65685415 : f32
    %2 = vector.broadcast %cst : f32 to vector<2x128xf32>
    %3 = arith.mulf %1, %2 : vector<2x128xf32>
    %c0_2 = arith.constant 0 : index
    %c0_3 = arith.constant 0 : index
    %4 = vector.load %arg3[%c0_2, %c0_3] : memref<2x128xf32, #tpu.memory_space<vmem>>, vector<2x128xf32>
    %5 = arith.addf %3, %4 : vector<2x128xf32>
    %c0_4 = arith.constant 0 : index
    %c0_5 = arith.constant 0 : index
    %c0_6 = arith.constant 0 : index
    %6 = vector.load %arg4[%c0_4, %c0_5, %c0_6] : memref<1x2x128xf32, #tpu.memory_space<vmem>>, vector<1x2x128xf32>
    %7 = vector.shape_cast %6 : vector<1x2x128xf32> to vector<2x128xf32>
    %8 = vector.shape_cast %5 : vector<2x128xf32> to vector<1x2x128xf32>
    tpu.vector_store %arg4[%c0_4, %c0_5, %c0_6], %8 {strides = array<i32>} : memref<1x2x128xf32, #tpu.memory_space<vmem>>, vector<1x2x128xf32>,
    return
  }
  func.func @transform_0(%arg0: i32, %arg1: i32) -> (i32, i32, i32) {
    %c0_i32 = arith.constant 0 : i32
    %c0_i32_0 = arith.constant 0 : i32
    return %arg1, %arg0, %c0_i32 : i32, i32, i32
  }
  func.func @transform_1(%arg0: i32, %arg1: i32) -> (i32, i32) {
    %c0_i32 = arith.constant 0 : i32
    %c0_i32_0 = arith.constant 0 : i32
    return %arg0, %c0_i32 : i32, i32
  }
  func.func @transform_2(%arg0: i32, %arg1: i32) -> (i32, i32, i32) {
    %c0_i32 = arith.constant 0 : i32
    %c0_i32_0 = arith.constant 0 : i32
    return %arg1, %arg0, %c0_i32 : i32, i32, i32
  }
}

</mosaic_0001>

<bundles_post_ra>
// kernel: tpu_custom_call.1
= control target key start
LH: loop header
LB: loop body
LE: loop exit
PB: predicated region body
PF: predicated region fallthrough
CT: control target
= control target key end

     0   :  { %7 = vsyncpa [#allocation3], 0  ;;  %s715_s0 = inlined_call_operand.hbm [shape: f32[2,2,128], index: 0, kind: input, shape index: {}]   ;;  %s716_s1 = inlined_call_operand.hbm [shape: f32[2,128], index: 1, kind: input, shape index: {}]   ;;  %s717_s2 = inlined_call_operand.hbm [shape: f32[2,2,128], index: 2, kind: output, shape index: {}]  }
   0x1   :  { %9 = vsyncpa [#allocation3 + $0x1], 0 }
   0x2   :  { %10 = vsyncpa [#allocation6], 0 }
   0x3   :  { %11 = vsyncpa [#allocation4], 0 }
   0x4   :  { %13 = vsyncpa [#allocation4 + $0x1], 0  ;;  %s566_s9 = smov 0   ;;  %s568_s10 = smov 0  }
   0x5   :  { %s570_s11 = smov 0   ;;  %s572_s12 = smov 0  }
   0x6   :  { %s574_s13 = smov 0   ;;  %s576_s14 = smov 0  }
   0x7 LB: > { %s314_s15 = sadd.s32 4294967295, %s548_s14   ;;  %s315_s16 = sadd.s32 4294967294, %s548_s14   ;;  %s548_s14 = sphi %s576_s14, %s19_s14   ;;  %s544_s13 = sphi %s574_s13, %s729_s13   ;;  %s540_s12 = sphi %s572_s12, %s728_s12   ;;  %s536_s11 = sphi %s570_s11, %s727_s11   ;;  %s532_s10 = sphi %s568_s10, %s726_s10   ;;  %s528_s9 = sphi %s566_s9, %s725_s9  }
   0x8   : > { %p53_p0 = scmp.ne.s32.totalorder %s532_s10, %s528_s9  ;;  %p600_p1 = scmp.eq.s32.totalorder %s314_s15, 0 }
   0x9   : > { %p604_p2 = scmp.eq.s32.totalorder %s314_s15, 1  ;;  %p111_p3 = scmp.eq.s32.totalorder %s315_s16, 1 }
   0xa   : > { %p610_p4 = por %p600_p1, %p53_p0  ;;  %p316_p5 = scmp.ge.s32.totalorder %s548_s14, 1 }
   0xb   : > { %p615_p6 = por %p111_p3, %p53_p0  ;;  %p118_p7 = scmp.lt.s32.totalorder %s548_s14, 3 }
   0xc   : > { %s132_s23 = sshll.u32 %s716_s1, 4  ;;  %p318_p9 = scmp.ge.s32.totalorder %s548_s14, 2  ;;  %s133_s23 = int_to_ptr.hbm [resolvable:$true] %s132_s23 }
   0xd   : > { %p623_p8 = pnand %p316_p5, %p118_p7  ;;  %s550_s25 = smov [#allocation5]  }
   0xe   : > { %s134_s26 = sshll.u32 %s550_s25, 4  ;;  %s28_s27 = sadd.s32 1, %s544_s13  ;;  %s135_s26 = int_to_ptr.vmem [resolvable:$true] %s134_s26 }
   0xf   : > { %p337_p10 = pneg %p623_p8  ;;  %p29_p12 = scmp.ge.s32.totalorder %s28_s27, 2 }
  0x10   : > { %s40_s28 = sadd.s32 1, %s536_s11  ;;  %p47_p13 = scmp.ne.s32.totalorder %s536_s11, %s532_s10 }
  0x11   : > { %p338_p11 = pnand %p337_p10, %p600_p1  ;;  %p48_p0 = scmp.eq.s32.totalorder %s548_s14, 0 }
  0x12   : > { %s731_s27 = smov (%p29_p12, %s28_s27), 0  ;;  %p645_p5 = por %p604_p2, %p47_p13 }
  0x13   : > { %340 = dma.hbm_to_vmem [thread:$0]  (!%p338_p11), %s133_s23, 32, %s135_s26, [#allocation6]  }
  0x14   : > { %p639_p3 = por %p48_p0, %p47_p13  ;;  %s35_s3 = ssub.s32 %s544_s13, %s731_s27 }
  0x15   : > { %p350_p7 = scmp.lt.s32.totalorder %s548_s14, 2  ;;  %p38_p10 = scmp.eq.s32.totalorder %s35_s3, 0 }
  0x16   : > { %s145_s4 = sand.u32 1, %s536_s11   ;;  %s320_s7 = sshll.u32 %s544_s13, 1 }
  0x17   : > { %s319_s5 = sshll.u32 %s145_s4, 1  ;;  %s154_s16 = scalar_lea.hbm %s715_s0, %s320_s7 }
  0x18   : > { %s654_s6 = scalar_select %p38_p10, %s536_s11, %s40_s28  }
  0x19   : > { %s149_s21 = scalar_lea.vmem [#allocation2], %s319_s5  ;;  %s156_s18 = sshll.u32 %s154_s16, 4  ;;  %s157_s18 = int_to_ptr.hbm [resolvable:$true] %s156_s18 }
  0x1a   : > { %s158_s22 = sshll.u32 %s149_s21, 4  ;;  %p342_p2 = pnand %p350_p7, %p639_p3  ;;  %s159_s22 = int_to_ptr.vmem [resolvable:$true] %s158_s22 }
  0x1b   : > { %s146_s23 = scalar_lea.sflag [#allocation3], %s145_s4  ;;  %167 = sbr.rel (%p623_p8) target bundleno = 50 (0x32), region = 28 }
  0x1c   : > { %344 = dma.hbm_to_vmem [thread:$0]  (!%p342_p2), %s157_s18, 32, %s159_s22, %s146_s23  }
  0x1d   : > { %s665_s25 = sand.u32 (!%p623_p8), 1, %s532_s10  }
  0x1e   : > { %s322_s26 = sshll.u32 (!%p623_p8), %s665_s25, 1  ;;  %s170_s28 = scalar_lea.sflag (!%p623_p8), [#allocation3], %s665_s25 }
  0x1f   : > { %s173_s3 = scalar_lea.vmem (!%p623_p8), [#allocation2], %s322_s26 }
  0x20   : > { %515 = dma.done.wait (%p610_p4), %s170_s28, 32  }
  0x21   : > { %517 = vsyncadd (%p610_p4), %s170_s28, 4294967264 }
  0x22   : > { %519 = dma.done.wait (%p600_p1), [#allocation6], 32  }
  0x23   : > { %521 = vsyncadd (%p600_p1), [#allocation6], 4294967264  ;;  %s326_s24 = sshll.u32 %s540_s12, 1  ;;  %v200_v0 = vld [vmem:[%s173_s3] sm:$0x3]  ;;  %s199_s7 = scalar_lea.vmem [#allocation7], %s322_s26 }
  0x24   : > { %s217_s5 = scalar_lea.hbm %s717_s2, %s326_s24  ;;  %v202_v1 = vld [vmem:[#allocation5] sm:$0x3]  ;;  %s219_s8 = sshll.u32 %s199_s7, 4  ;;  %v201_v2 = vmul.f32 5.656854, %v200_v0  ;;  %s220_s8 = int_to_ptr.vmem [resolvable:$true] %s219_s8 }
  0x25   : > { %s221_s19 = sshll.u32 %s217_s5, 4  ;;  %s206_s17 = scalar_lea.sflag [#allocation4], %s665_s25  ;;  %s222_s19 = int_to_ptr.hbm [resolvable:$true] %s221_s19 }
  0x26   : > { %v203_v3 = vadd.f32 %v202_v1, %v201_v2  ;;  %s476_s15 = sshra.s32 %s222_s19, 4  ;;  %s482_s22 = scalar_lea.hbm %s717_s2, 4  ;;  %s477_s15 = int_to_ptr.hbm [resolvable:$true] %s476_s15 }
  0x27   : > { %s478_s16 = scalar_lea.hbm %s477_s15, 2  ;;  %p483_p11 = scmp.lt.s32.totalorder %s477_s15, %s717_s2 }
  0x28   : > { %204 = vst [vmem:[%s199_s7] sm:$0x3] %v203_v3  ;;  %p479_p1 = scmp.ne.s32.totalorder %s477_s15, %s478_s16  ;;  %p484_p12 = scmp.lt.s32.totalorder %s482_s22, %s478_s16 }
  0x2a   : > { %p480_p4 = pnand %p479_p1, %p645_p5  ;;  %p485_p13 = por %p484_p12, %p483_p11 }
  0x2c   : > { %p481_p8 = pneg %p480_p4 }
  0x2e   : > { %p486_p0 = pnand %p485_p13, %p481_p8 }
  0x30   : > { %489 = shalt.err (!%p486_p0)
}
  0x31   : > { %335 = dma.vmem_to_hbm [thread:$0]  (%p645_p5), %s220_s8, 32, %s222_s19, %s206_s17  }
  0x32 PF: > { %s233_s25 = sand.u32 1, %s528_s9   ;;  %p346_p3 = pnand %p318_p9, %p615_p6 }
  0x33   : > { %s234_s26 = scalar_lea.sflag [#allocation4], %s233_s25 }
  0x34   : > { %p347_p7 = pneg %p346_p3 }
  0x36   : > { %523 = dma.done.wait (%p347_p7), %s234_s26, 32  }
  0x37   : > { %525 = vsyncadd (%p347_p7), %s234_s26, 4294967264  ;;  %s19_s14 = sadd.s32 1, %s548_s14   ;;  %s725_s9 = smov %s532_s10 }
  0x38   : > { %p16_p10 = scmp.ge.s32.totalorder %s19_s14, 4   ;;  %s726_s10 = smov %s536_s11 }
  0x39   : > { %s727_s11 = smov %s654_s6  ;;  %s728_s12 = smov %s544_s13 }
  0x3a   : > { %s729_s13 = smov %s731_s27  ;;  %18 = sbr.rel (!%p16_p10) target bundleno = 7 (0x7), region = 78 }
  0x3f   :  { %240 = vsyncpa [#allocation3], 1 }
  0x40   :  { %242 = vsyncpa [#allocation3 + $0x1], 1 }
  0x41   :  { %243 = vsyncpa [#allocation6], 1 }
  0x42   :  { %244 = vsyncpa [#allocation4], 1 }
  0x43   :  { %246 = vsyncpa [#allocation4 + $0x1], 1 }

</bundles_post_ra>
